<compile_context>
chip_gen: v6e
topology: v6e:2x2x1
jax: 0.10.0
libtpu: 0.0.40
codegen_flags: <defaults>
</compile_context>

<pallas_src>
import jax
import jax.numpy as jnp
from jax.experimental import pallas as pl
from jax.experimental.pallas import tpu as pltpu


_LANE = 128
_TARGET_BLOCK_BYTES = 4 * 1024 * 1024   # ~4 MiB per block buffer
_VMEM_LIMIT_BYTES = 32 * 1024 * 1024    # 4 buffers * 4 MiB = 16 MiB + headroom


def _round_up(v: int, m: int) -> int:
    return ((v + m - 1) // m) * m


def _log_hidden_kernel(x_ref, o_ref):
    x = x_ref[...]
    xf = x.astype(jnp.float32)           # in-register upcast (free for f32)
    pos = xf >= 0.0

    # Negative branch: -softplus(-x) == x - log1p(exp(x)).
    # Clamp the exp argument to <= 0 so t in (0, 1] and everything is finite.
    t = jnp.exp(jnp.minimum(xf, 0.0))
    u = 1.0 + t

    # Single shared log: log(x + 0.5) on positive lanes, log(1 + t) on the rest.
    v = jnp.where(pos, jnp.maximum(xf, 0.0) + 0.5, u)   # arg >= 0.5 everywhere
    r = jnp.log(v)

    # Kahan-style log1p: exact where 1 + t rounds to 1 (x < ~-16.6), ~1 ulp
    # elsewhere -> matches PyTorch softplus (log1p + threshold=20) behaviour.
    lp = jnp.where(u == 1.0, t, r * (t / (u - 1.0)))

    out = jnp.where(pos, r, xf - lp)
    o_ref[...] = out.astype(o_ref.dtype)


def log_hidden_activation(x: jax.Array) -> jax.Array:
    """Elementwise LogHiddenActivation via a single Pallas TPU kernel."""
    orig_shape = x.shape
    dtype = x.dtype
    n = x.size
    if n == 0:
        return x
    itemsize = jnp.dtype(dtype).itemsize

    if n % _LANE == 0:
        # Common case: pure metadata reshape, zero extra HBM passes.
        rows = n // _LANE
        pad = 0
        x2d = x.reshape(rows, _LANE)
    else:
        # TODO(synk): rare ragged fallback still pays one pad + one slice HBM
        # pass; a scalar-prefetched element count + masked tail store would
        # make this a single read+write pass (low priority path).
        rows = pl.cdiv(n, _LANE)
        pad = rows * _LANE - n
        x2d = jnp.pad(x.reshape(-1), (0, pad)).reshape(rows, _LANE)

    # Dtype-aware row tile: ~4 MiB per buffer (8192 rows f32, 16384 rows bf16).
    tr_max = max(8, _TARGET_BLOCK_BYTES // (_LANE * itemsize))
    if rows < 16:
        # Tiny tensor: one full-extent block (legal even if rows % 8 != 0).
        tr = rows
    else:
        # Guarantee >= 2 grid steps so the "parallel" axis shards across both
        # TensorCores on v7x; tile stays a multiple of 8 sublanes.
        tr = min(tr_max, _round_up(pl.cdiv(rows, 2), 8))
    grid = (pl.cdiv(rows, tr),)

    cost = pl.CostEstimate(
        flops=10 * n,
        transcendentals=3 * n,           # exp + log + divide per element
        bytes_accessed=2 * n * itemsize,
    )

    out2d = pl.pallas_call(
        _log_hidden_kernel,
        out_shape=jax.ShapeDtypeStruct((rows, _LANE), dtype),
        grid_spec=pltpu.PrefetchScalarGridSpec(
            num_scalar_prefetch=0,
            grid=grid,
            in_specs=[pl.BlockSpec((tr, _LANE), lambda i: (i, 0))],
            out_specs=pl.BlockSpec((tr, _LANE), lambda i: (i, 0)),
        ),
        compiler_params=pltpu.CompilerParams(
            dimension_semantics=("parallel",),
            vmem_limit_bytes=_VMEM_LIMIT_BYTES,
        ),
        cost_estimate=cost,
    )(x2d)

    if pad:
        return out2d.reshape(-1)[:n].reshape(orig_shape)
    return out2d.reshape(orig_shape)


def _reference(x: jax.Array) -> jax.Array:
    """Pure-JAX reference matching the PyTorch module (f32 math, log1p)."""
    xf = x.astype(jnp.float32)
    z = -xf
    sp = jnp.where(
        z > 20.0,
        z,
        jnp.log1p(jnp.exp(jnp.minimum(z, 20.0))),
    )
    return jnp.where(xf >= 0.0, jnp.log(xf + 0.5), -sp).astype(x.dtype)


if __name__ == "__main__":
    key = jax.random.PRNGKey(0)
    # Elementwise op on hidden states; NCHW-like small shape (rows=16 -> 2-step
    # parallel grid, exercising the megacore-friendly path).
    x = jax.random.normal(key, (2, 4, 16, 16), dtype=jnp.float32) * 2.0

    y = log_hidden_activation(x)
    jax.block_until_ready(y)
    y_ref = _reference(x)
    assert y.shape == x.shape and y.dtype == x.dtype
    assert jnp.allclose(y, y_ref, atol=1e-5, rtol=1e-5), "f32 mismatch vs reference"

    # Native-dtype (bf16) path: dtype-aware tile, kernel upcasts in-register.
    xb = x.astype(jnp.bfloat16)
    yb = log_hidden_activation(xb)
    jax.block_until_ready(yb)
    yb_ref = _reference(xb)
    assert yb.shape == xb.shape and yb.dtype == jnp.bfloat16
    assert jnp.allclose(
        yb.astype(jnp.float32), yb_ref.astype(jnp.float32), atol=2e-2, rtol=2e-2
    ), "bf16 mismatch vs reference"

    # Larger slab: multi-row blocks (tr multiple of 8), 2-step grid.
    x_big = jax.random.normal(jax.random.PRNGKey(2), (512, 1024), dtype=jnp.float32) * 4.0
    y_big = log_hidden_activation(x_big)
    jax.block_until_ready(y_big)
    assert jnp.allclose(y_big, _reference(x_big), atol=1e-5, rtol=1e-5), "large mismatch"

    # Non-multiple-of-128 fallback path.
    x_odd = jax.random.normal(jax.random.PRNGKey(1), (3, 5, 7), dtype=jnp.float32)
    y_odd = log_hidden_activation(x_odd)
    jax.block_until_ready(y_odd)
    assert jnp.allclose(y_odd, _reference(x_odd), atol=1e-5, rtol=1e-5), "odd-size mismatch"

    print("KERNEL_OK")
</pallas_src>

<mosaic_0001>
module attributes {stable_mosaic.version = 11 : i64} {
  func.func @_log_hidden_kernel(%arg0: i32, %arg1: memref<8x128xf32, #tpu.memory_space<vmem>>, %arg2: memref<8x128xf32, #tpu.memory_space<vmem>>) attributes {dimension_semantics = [#tpu.dimension_semantics<parallel>], iteration_bounds = array<i64: 2>, scalar_prefetch = 0 : i64, scratch_operands = 0 : i64, tpu.core_type = #tpu.core_type<tc>, window_params = [{transform_indices = @transform_0, window_bounds = array<i64: 8, 128>}, {transform_indices = @transform_1, window_bounds = array<i64: 8, 128>}]} {
    %c0 = arith.constant 0 : index
    %c0_0 = arith.constant 0 : index
    %0 = vector.load %arg1[%c0, %c0_0] : memref<8x128xf32, #tpu.memory_space<vmem>>, vector<8x128xf32>
    %cst = arith.constant 0.000000e+00 : f32
    %1 = vector.broadcast %cst : f32 to vector<8x128xf32>
    %2 = arith.cmpf oge, %0, %1 : vector<8x128xf32>
    %cst_1 = arith.constant 0.000000e+00 : f32
    %3 = vector.broadcast %cst_1 : f32 to vector<8x128xf32>
    %4 = arith.minimumf %0, %3 : vector<8x128xf32>
    %5 = math.exp %4 : vector<8x128xf32>
    %cst_2 = arith.constant 1.000000e+00 : f32
    %6 = vector.broadcast %cst_2 : f32 to vector<8x128xf32>
    %7 = arith.addf %6, %5 : vector<8x128xf32>
    %cst_3 = arith.constant 0.000000e+00 : f32
    %8 = vector.broadcast %cst_3 : f32 to vector<8x128xf32>
    %9 = arith.maximumf %0, %8 : vector<8x128xf32>
    %cst_4 = arith.constant 5.000000e-01 : f32
    %10 = vector.broadcast %cst_4 : f32 to vector<8x128xf32>
    %11 = arith.addf %9, %10 : vector<8x128xf32>
    %12 = arith.select %2, %11, %7 : vector<8x128xi1>, vector<8x128xf32>
    %13 = math.log %12 : vector<8x128xf32>
    %cst_5 = arith.constant 1.000000e+00 : f32
    %14 = vector.broadcast %cst_5 : f32 to vector<8x128xf32>
    %15 = arith.cmpf oeq, %7, %14 : vector<8x128xf32>
    %cst_6 = arith.constant 1.000000e+00 : f32
    %16 = vector.broadcast %cst_6 : f32 to vector<8x128xf32>
    %17 = arith.subf %7, %16 : vector<8x128xf32>
    %18 = arith.divf %5, %17 : vector<8x128xf32>
    %19 = arith.mulf %13, %18 : vector<8x128xf32>
    %20 = arith.select %15, %5, %19 : vector<8x128xi1>, vector<8x128xf32>
    %21 = arith.subf %0, %20 : vector<8x128xf32>
    %22 = arith.select %2, %13, %21 : vector<8x128xi1>, vector<8x128xf32>
    %c0_7 = arith.constant 0 : index
    %c0_8 = arith.constant 0 : index
    %23 = vector.load %arg2[%c0_7, %c0_8] : memref<8x128xf32, #tpu.memory_space<vmem>>, vector<8x128xf32>
    tpu.vector_store %arg2[%c0_7, %c0_8], %22 {strides = array<i32>} : memref<8x128xf32, #tpu.memory_space<vmem>>, vector<8x128xf32>,
    return
  }
  func.func @transform_0(%arg0: i32) -> (i32, i32) {
    %c0_i32 = arith.constant 0 : i32
    %c0_i32_0 = arith.constant 0 : i32
    return %arg0, %c0_i32 : i32, i32
  }
  func.func @transform_1(%arg0: i32) -> (i32, i32) {
    %c0_i32 = arith.constant 0 : i32
    %c0_i32_0 = arith.constant 0 : i32
    return %arg0, %c0_i32 : i32, i32
  }
}

</mosaic_0001>

<bundles_post_ra>
// kernel: tpu_custom_call.1
= control target key start
LH: loop header
LB: loop body
LE: loop exit
PB: predicated region body
PF: predicated region fallthrough
CT: control target
= control target key end

     0   :  { %6 = vsyncpa [#allocation3], 0  ;;  %s556_s0 = inlined_call_operand.hbm [shape: f32[16,128], index: 0, kind: input, shape index: {}]   ;;  %s557_s1 = inlined_call_operand.hbm [shape: f32[16,128], index: 1, kind: output, shape index: {}]  }
   0x1   :  { %8 = vsyncpa [#allocation3 + $0x1], 0 }
   0x2   :  { %9 = vsyncpa [#allocation4], 0 }
   0x3   :  { %11 = vsyncpa [#allocation4 + $0x1], 0  ;;  %s407_s6 = smov 0   ;;  %s409_s7 = smov 0  }
   0x4   :  { %s411_s8 = smov 0   ;;  %s413_s9 = smov 0  }
   0x5 LB: > { %s428_s10 = sadd.s32 4294967295, %s393_s9   ;;  %s236_s11 = sadd.s32 4294967294, %s393_s9   ;;  %s393_s9 = sphi %s413_s9, %s574_s9   ;;  %s389_s8 = sphi %s411_s8, %s573_s8   ;;  %s385_s7 = sphi %s409_s7, %s572_s7   ;;  %s381_s6 = sphi %s407_s6, %s571_s6  }
   0x6   : > { %s432_s12 = sadd.s32 1, %s393_s9   ;;  %s24_s13 = sadd.s32 1, %s389_s8 }
   0x7   : > { %s21_s14 = ssub.s32 %s393_s9, %s432_s12  ;;  %p31_p0 = scmp.ne.s32.totalorder %s389_s8, %s385_s7 }
   0x8   : > { %p22_p1 = scmp.eq.s32.totalorder %s21_s14, 0  ;;  %p32_p2 = scmp.eq.s32.totalorder %s393_s9, 0 }
   0x9   : > { %p37_p3 = scmp.ne.s32.totalorder %s385_s7, %s381_s6  ;;  %p38_p4 = scmp.eq.s32.totalorder %s428_s10, 0 }
   0xa   : > { %s444_s15 = scalar_select %p22_p1, %s389_s8, %s24_s13  }
   0xb   : > { %p446_p5 = por %p32_p2, %p31_p0  ;;  %p450_p6 = por %p38_p4, %p37_p3 }
   0xc   : > { %p61_p7 = scmp.eq.s32.totalorder %s428_s10, 1  ;;  %p67_p8 = scmp.eq.s32.totalorder %s236_s11, 1 }
   0xd   : > { %s561_s17 = scalar_select %p450_p6, 1, 0 }
   0xe   : > { %p261_p10 = scmp.lt.s32.totalorder %s393_s9, 2  ;;  %p457_p11 = por %p61_p7, %p31_p0 }
   0xf   : > { %p461_p12 = por %p67_p8, %p37_p3  ;;  %s87_s20 = sand.u32 1, %s389_s8  }
  0x10   : > { %s562_s18 = scalar_select %p457_p11, 1, 0 }
  0x11   : > { %s563_s19 = scalar_select %p461_p12, 1, 0 }
  0x12   : > { %s240_s21 = sshll.u32 %s393_s9, 7  ;;  %s239_s22 = sshll.u32 %s87_s20, 3 }
  0x13   : > { %s470_s25 = scalar_lea.hbm %s556_s0, %s240_s21  ;;  %s91_s26 = scalar_lea.vmem [#allocation2], %s239_s22 }
  0x14   : > { %s98_s27 = sshll.u32 %s91_s26, 4  ;;  %p474_p13 = pnand %p261_p10, %p446_p5  ;;  %s478_s27 = int_to_ptr.vmem [resolvable:$true] %s98_s27 }
  0x15   : > { %s88_s29 = scalar_lea.sflag [#allocation3], %s87_s20  ;;  %s301_s30 = scalar_lea.hbm %s470_s25, 128 }
  0x16   : > { %p302_p2 = scmp.ne.s32.totalorder %s470_s25, %s301_s30  ;;  %p303_p3 = pneg %p474_p13 }
  0x17   : > { %s306_s4 = scalar_lea.hbm %s556_s0, 256  ;;  %p307_p5 = scmp.lt.s32.totalorder %s470_s25, %s556_s0 }
  0x18   : > { %p304_p4 = pnand %p303_p3, %p302_p2  ;;  %p308_p8 = scmp.lt.s32.totalorder %s306_s4, %s301_s30 }
  0x1a   : > { %p305_p7 = pneg %p304_p4  ;;  %p309_p10 = por %p308_p8, %p307_p5 }
  0x1c   : > { %p310_p9 = pnand %p309_p10, %p305_p7 }
  0x1e   : > { %313 = shalt.err (!%p310_p9)
}
  0x1f   : > { %s314_s13 = scalar_lea.vmem %s478_s27, 128  ;;  %s395_s14 = smov [#allocation2]  }
  0x20   : > { %p315_p0 = scmp.ne.s32.totalorder %s478_s27, %s314_s13  ;;  %s319_s16 = sshll.u32 %s395_s14, 4  ;;  %s320_s16 = int_to_ptr.vmem [resolvable:$false] %s319_s16 }
  0x21   : > { %s321_s20 = scalar_lea.vmem %s320_s16, 256  ;;  %p322_p4 = scmp.lt.s32.totalorder %s478_s27, %s320_s16 }
  0x22   : > { %p317_p1 = pnand %p315_p0, %p303_p3  ;;  %p323_p12 = scmp.lt.s32.totalorder %s321_s20, %s314_s13 }
  0x24   : > { %p318_p2 = pneg %p317_p1  ;;  %p324_p11 = por %p323_p12, %p322_p4 }
  0x26   : > { %p325_p6 = pnand %p324_p11, %p318_p2 }
  0x28   : > { %328 = shalt.err (!%p325_p6)
}
  0x29   : > { %256 = dma.hbm_to_vmem [thread:$0]  (!%p474_p13), %s470_s25, 128, %s478_s27, %s88_s29  }
  0x2a   : > { %p565_p9 = scmp.lt.s32.totalorder %s393_s9, 3  ;;  %p566_p7 = scmp.ge.s32.totalorder %s393_s9, 1 }
  0x2c   : > { %p104_p0 = pnand %p566_p7, %p565_p9 }
  0x2d   : > { %s505_s21 = sand.u32 (!%p104_p0), 1, %s385_s7   ;;  %p567_p6 = scmp.ne.s32.totalorder (!%p104_p0), %s561_s17, 0 }
  0x2e   : > { %107 = sbr.rel (%p104_p0) target bundleno = 110 (0x6e), region = 24  ;;  %s242_s22 = sshll.u32 (!%p104_p0), %s505_s21, 3 }
  0x2f   : > { %s110_s23 = scalar_lea.sflag (!%p104_p0), [#allocation3], %s505_s21  ;;  %s113_s24 = scalar_lea.vmem (!%p104_p0), [#allocation2], %s242_s22 }
  0x33   : > { %372 = dma.done.wait (%p567_p6), %s110_s23, 128  }
  0x34   : > { %374 = vsyncadd (%p567_p6), %s110_s23, 4294967168  ;;  %v132_v0 = vld [vmem:[%s113_s24] sm:$0xff]  ;;  %s131_s17 = scalar_lea.vmem [#allocation5], %s242_s22  ;;  %s246_s26 = sshll.u32 %s428_s10, 7 }
  0x35   : > { %v134_v1 = vmin.f32 %v132_v0, 0.0  ;;  %v138_v3 = vmax.f32 %v132_v0, 0.0  ;;  %vm133_vm0 = vcmp.ge.f32.partialorder %v132_v0, 0.0  ;;  %s166_s25 = sshll.u32 %s131_s17, 4  ;;  %s164_s29 = scalar_lea.hbm %s557_s1, %s246_s26  ;;  %s515_s25 = int_to_ptr.vmem [resolvable:$true] %s166_s25 }
  0x36   : > { %s153_s30 = scalar_lea.sflag [#allocation4], %s505_s21  ;;  %s329_s2 = scalar_lea.vmem %s515_s25, 128 }
  0x37   : > { %v135_v2 = vmul.f32 1.442695, %v134_v1  ;;  %v139_v4 = vadd.f32 0.5, %v138_v3  ;;  %p330_p11 = scmp.ne.s32.totalorder %s515_s25, %s329_s2  ;;  %p568_p12 = scmp.ne.s32.totalorder %s562_s18, 0 }
  0x38   : > { %s396_s10 = smov [#allocation5]  }
  0x39   : > { %295 = vpow2.f32 %v135_v2  ;;  %p331_p13 = pnand %p330_p11, %p568_p12  ;;  %s333_s3 = sshll.u32 %s396_s10, 4  ;;  %s334_s3 = int_to_ptr.vmem [resolvable:$false] %s333_s3 }
  0x3a   : > { %s335_s4 = scalar_lea.vmem %s334_s3, 256  ;;  %p336_p3 = scmp.lt.s32.totalorder %s515_s25, %s334_s3 }
  0x3b   : > { %p332_p1 = pneg %p331_p13  ;;  %p337_p5 = scmp.lt.s32.totalorder %s335_s4, %s329_s2 }
  0x3d   : > { %p338_p8 = por %p337_p5, %p336_p3 }
  0x3f   : > { %p339_p10 = pnand %p338_p8, %p332_p1 }
  0x46   : > { %v296_v5 = vpop.eup %295 }
  0x47   : > { %v137_v6 = vadd.f32 1.0, %v296_v5 }
  0x49   : > { %v140_v7 = vsel %vm133_vm0, %v139_v4, %v137_v6  ;;  %v244_v8 = vadd.f32 -1.0, %v137_v6  ;;  %vm143_vm1 = vcmp.eq.f32.partialorder %v137_v6, 1.0 }
  0x4a   : > { %297 = vlog2.f32 %v140_v7 }
  0x4b   : > { %299 = vrcp.f32 %v244_v8 }
  0x57   : > { %v298_v9 = vpop.eup %297 }
  0x58   : > { %v300_v10 = vpop.eup %299  ;;  %v142_v11 = vmul.f32 0.6931472, %v298_v9 }
  0x59   : > { %v146_v12 = vmul.f32 %v300_v10, %v296_v5 }
  0x5b   : > { %v147_v13 = vmul.f32 %v146_v12, %v142_v11 }
  0x5d   : > { %v148_v14 = vsel %vm143_vm1, %v296_v5, %v147_v13 }
  0x5e   : > { %v149_v15 = vsub.f32 %v132_v0, %v148_v14 }
  0x60   : > { %v150_v16 = vsel %vm133_vm0, %v142_v11, %v149_v15 }
  0x61   : > { %151 = vst [vmem:[%s131_s17] sm:$0xff] %v150_v16 }
  0x62   : > { %342 = shalt.err (!%p339_p10)
}
  0x63   : > { %s343_s5 = scalar_lea.hbm %s164_s29, 128  ;;  %s347_s14 = scalar_lea.hbm %s557_s1, 256 }
  0x64   : > { %p344_p2 = scmp.ne.s32.totalorder %s164_s29, %s343_s5  ;;  %p348_p7 = scmp.lt.s32.totalorder %s164_s29, %s557_s1 }
  0x65   : > { %p349_p0 = scmp.lt.s32.totalorder %s347_s14, %s343_s5 }
  0x66   : > { %p345_p4 = pnand %p344_p2, %p568_p12 }
  0x67   : > { %p350_p6 = por %p349_p0, %p348_p7 }
  0x68   : > { %p346_p9 = pneg %p345_p4 }
  0x6a   : > { %p351_p11 = pnand %p350_p6, %p346_p9 }
  0x6c   : > { %354 = shalt.err (!%p351_p11)
}
  0x6d   : > { %251 = dma.vmem_to_hbm [thread:$0]  (%p568_p12), %s515_s25, 128, %s164_s29, %s153_s30  }
  0x6e PF: > { %s178_s21 = sand.u32 1, %s381_s6   ;;  %p569_p13 = scmp.ne.s32.totalorder %s563_s19, 0 }
  0x6f   : > { %p570_p1 = scmp.ge.s32.totalorder %s393_s9, 2  ;;  %s179_s22 = scalar_lea.sflag [#allocation4], %s178_s21 }
  0x71   : > { %p258_p3 = pnand %p570_p1, %p569_p13 }
  0x73   : > { %p259_p5 = pneg %p258_p3 }
  0x75   : > { %376 = dma.done.wait (%p259_p5), %s179_s22, 128  }
  0x76   : > { %378 = vsyncadd (%p259_p5), %s179_s22, 4294967168  ;;  %p14_p8 = scmp.ge.s32.totalorder %s432_s12, 4   ;;  %s571_s6 = smov %s385_s7 }
  0x77   : > { %s572_s7 = smov %s389_s8  ;;  %s573_s8 = smov %s444_s15 }
  0x78   : > { %s574_s9 = smov %s432_s12  ;;  %16 = sbr.rel (!%p14_p8) target bundleno = 5 (0x5), region = 69 }
  0x7d   :  { %184 = vsyncpa [#allocation3], 1 }
  0x7e   :  { %186 = vsyncpa [#allocation3 + $0x1], 1 }
  0x7f   :  { %187 = vsyncpa [#allocation4], 1 }
  0x80   :  { %189 = vsyncpa [#allocation4 + $0x1], 1 }

</bundles_post_ra>
